<compile_context>
chip_gen: v6e
topology: v6e:2x2x1
jax: 0.10.0
libtpu: 0.0.40
codegen_flags: <defaults>
</compile_context>

<pallas_src>
import numpy as np
import jax
import jax.numpy as jnp
from jax import lax
from jax.experimental import pallas as pl
from jax.experimental.pallas import tpu as pltpu

KSIZE = 5
PAD = KSIZE // 2


# --------------------------------------------------------------------------- #
# hardware queries (best-effort, safe fallbacks)
# --------------------------------------------------------------------------- #
def _tpu_vmem_capacity():
    try:
        info = pltpu.get_tpu_info()
        cap = getattr(info, "vmem_capacity_bytes", None)
        if cap:
            return int(cap)
    except Exception:
        pass
    return 64 << 20  # conservative: v7x per-TensorCore VMEM


def _num_tensorcores():
    """TensorCores visible to one pallas_call (v7x / megacore chips have 2)."""
    try:
        kind = jax.devices()[0].device_kind.lower()
    except Exception:
        return 1
    return 2 if any(tag in kind for tag in ("7", "v4", "v5p")) else 1


def _channel_budget(vmem_cap):
    # per-buffer budget (f32-equivalent bytes) for the (nb, tc, HWp) input tile
    return (6 << 20) if vmem_cap <= (64 << 20) else (10 << 20)


def _pick_nb(N, C, HWp, num_tc, budget):
    max_nb = max(1, budget // (max(1, min(8, C)) * HWp * 4))
    divs = [c for c in (256, 128, 64, 32, 16, 8, 4, 2, 1)
            if N % c == 0 and c <= max_nb]
    if not divs:
        divs = [1]
    if num_tc >= 2:
        # keep >=2 batch blocks and prefer an even split across the cores
        for c in divs:
            g = N // c
            if g >= 2 and g % num_tc == 0:
                return c
        for c in divs:
            if N // c >= 2:
                return c
    return divs[0]


def _pick_tc(C, nb, HWp, budget):
    per_ch = nb * HWp * 4
    max_ch = max(1, budget // per_ch)
    if C <= max_ch:
        return C
    # partial channel tile: keep it a multiple of 8 for (8,128) sublane tiling
    return max(8, (max_ch // 8) * 8)


# --------------------------------------------------------------------------- #
# banded conv matrix (host-side numpy: avoids trace-time device blow-up)
# --------------------------------------------------------------------------- #
def _make_flat_band(weight, C, H, W):
    """weight: (1, 2, KSIZE, KSIZE) conv weight (OIHW), no bias.

    Returns band (2*H*W, H*W) f32 such that, with feat = [sum_c x | max_c x]
    flattened over (H, W):
        feat @ band == conv2d(cat[mean, max], weight, padding=PAD).flatten()
    (the 1/C of the channel mean is folded into the first H*W rows).
    """
    K = np.asarray(weight).astype(np.float32)[0]             # (2, KSIZE, KSIZE)
    hp = np.arange(H)[:, None]
    h = np.arange(H)[None, :]
    ki = hp - h + PAD                                         # (H, H)
    wp = np.arange(W)[:, None]
    w = np.arange(W)[None, :]
    kj = wp - w + PAD                                         # (W, W)
    mask = (((ki >= 0) & (ki < KSIZE))[:, None, :, None]
            & ((kj >= 0) & (kj < KSIZE))[None, :, None, :])   # (H, W, H, W)
    ki_c = np.clip(ki, 0, KSIZE - 1)
    kj_c = np.clip(kj, 0, KSIZE - 1)
    band = K[:, ki_c[:, None, :, None], kj_c[None, :, None, :]]   # (2,H,W,H,W)
    band = np.where(mask[None], band, np.float32(0.0)).astype(np.float32)
    band[0] *= np.float32(1.0 / C)                            # fold channel mean
    return band.reshape(2 * H * W, H * W)


# --------------------------------------------------------------------------- #
# kernel
# --------------------------------------------------------------------------- #
def _make_kernel(C, nb, tc, hwp, needs_cmask):
    neg_inf = jnp.float32(-jnp.inf)

    def kernel(x_ref, band_ref, o_ref, feat_sc):
        # x_ref:    (1, nb, tc, hwp)  one channel tile (native dtype)
        # band_ref: (2*hwp, hwp)      flattened 5x5 conv (f32, constant)
        # o_ref:    (1, nb, hwp)      sigmoid(conv(cat[mean, max])), lane-dense
        # feat_sc:  (nb, 2*hwp) f32   running [channel-sum | channel-max]
        k = pl.program_id(1)

        # ---- fused channel sum / max for this tile (f32 accumulation) ----
        if tc <= 16:
            # small tile: static per-channel unroll -> only the two (nb, hwp)
            # accumulators stay live, no materialized full-tile f32 copy.
            s = jnp.zeros((nb, hwp), jnp.float32)
            m = jnp.full((nb, hwp), -jnp.inf, jnp.float32)
            for c in range(tc):
                xc = x_ref[0, :, c, :].astype(jnp.float32)
                if needs_cmask:
                    valid = (k * tc + c) < C
                    s = s + jnp.where(valid, xc, 0.0)
                    m = jnp.maximum(m, jnp.where(valid, xc, neg_inf))
                else:
                    s = s + xc
                    m = jnp.maximum(m, xc)
        else:
            xt = x_ref[0].astype(jnp.float32)                 # (nb, tc, hwp)
            if needs_cmask:
                cidx = k * tc + lax.broadcasted_iota(jnp.int32, (1, tc, 1), 1)
                valid = cidx < C
                s = jnp.sum(jnp.where(valid, xt, 0.0), axis=1)
                m = jnp.max(jnp.where(valid, xt, neg_inf), axis=1)
            else:
                s = jnp.sum(xt, axis=1)
                m = jnp.max(xt, axis=1)

        @pl.when(k == 0)
        def _():
            feat_sc[:, :hwp] = s
            feat_sc[:, hwp:] = m

        @pl.when(k != 0)
        def _():
            feat_sc[:, :hwp] = feat_sc[:, :hwp] + s
            feat_sc[:, hwp:] = jnp.maximum(feat_sc[:, hwp:], m)

        @pl.when(k == pl.num_programs(1) - 1)
        def _():
            # Single MXU matmul: (nb, 2*hwp) @ (2*hwp, hwp) = padded 5x5 conv
            # of [mean | max] (1/C folded into band). Band stays f32: a bf16
            # band would halve VMEM but miss the 1e-5 match vs the f32 conv.
            y = jnp.dot(feat_sc[...], band_ref[...],
                        preferred_element_type=jnp.float32)
            o_ref[0] = jax.nn.sigmoid(y).astype(o_ref.dtype)

    return kernel


# --------------------------------------------------------------------------- #
# wrapper
# --------------------------------------------------------------------------- #
def spatial_attention(x, weight, *, nb=None, tc=None):
    N, C, H, W = x.shape
    HW = H * W
    HWp = -(-HW // 128) * 128                       # lane-pad to multiple of 128

    vmem_cap = _tpu_vmem_capacity()
    num_tc = _num_tensorcores()
    budget = _channel_budget(vmem_cap)

    if nb is None:
        nb = _pick_nb(N, C, HWp, num_tc, budget)
    G = N // nb
    if tc is None:
        tc = _pick_tc(C, nb, HWp, budget)
    tc = min(tc, C)
    KC = pl.cdiv(C, tc)
    needs_cmask = (C % tc) != 0

    # ---- setup glue (host numpy / plain JAX reshapes) ----
    band_np = _make_flat_band(weight, C, H, W)       # (2*HW, HW) f32
    if HWp != HW:
        padded = np.zeros((2 * HWp, HWp), np.float32)
        padded[:HW, :HW] = band_np[:HW]
        padded[HWp:HWp + HW, :HW] = band_np[HW:]
        band_np = padded
    band = jnp.asarray(band_np)

    x_flat = x.reshape(N, C, HW)
    if HWp != HW:
        x_flat = jnp.pad(x_flat, ((0, 0), (0, 0), (0, HWp - HW)))
    x_blk = x_flat.reshape(G, nb, C, HWp)            # lane-dense input layout

    kernel = _make_kernel(C, nb, tc, HWp, needs_cmask)

    def build(single_band):
        band_kwargs = {"pipeline_mode": pl.Buffered(1)} if single_band else {}
        grid_spec = pltpu.PrefetchScalarGridSpec(
            num_scalar_prefetch=0,
            grid=(G, KC),                            # reduction axis last
            in_specs=[
                pl.BlockSpec((1, nb, tc, HWp), lambda i, k: (i, 0, k, 0)),
                pl.BlockSpec((2 * HWp, HWp), lambda i, k: (0, 0), **band_kwargs),
            ],
            out_specs=pl.BlockSpec((1, nb, HWp), lambda i, k: (i, 0, 0)),
            scratch_shapes=[pltpu.VMEM((nb, 2 * HWp), jnp.float32)],
        )
        band_bufs = 1 if single_band else 2
        itemsize = x.dtype.itemsize
        vmem_need = (2 * nb * tc * HWp * itemsize            # double-buffered in
                     + 2 * nb * HWp * itemsize               # double-buffered out
                     + band_bufs * 2 * HWp * HWp * 4         # band
                     + nb * 2 * HWp * 4                      # [sum|max] scratch
                     + (nb * tc * HWp * 4 if tc > 16 else 0))  # possible f32 temp
        vmem_limit = int(min(max(2 * vmem_need, 24 << 20), int(vmem_cap * 0.75)))
        return pl.pallas_call(
            kernel,
            out_shape=jax.ShapeDtypeStruct((G, nb, HWp), x.dtype),
            grid_spec=grid_spec,
            compiler_params=pltpu.CompilerParams(
                dimension_semantics=("parallel", "arbitrary"),
                vmem_limit_bytes=vmem_limit,
            ),
        )

    try:
        out = build(True)(x_blk, band)
    except Exception:
        # Fallback if single-buffered constant band (pl.Buffered(1)) is rejected.
        out = build(False)(x_blk, band)

    return out.reshape(N, HWp)[:, :HW].reshape(N, 1, H, W)


# --------------------------------------------------------------------------- #
# reference + test
# --------------------------------------------------------------------------- #
def _reference(x, weight):
    avg = jnp.mean(x, axis=1, keepdims=True)
    mx = jnp.max(x, axis=1, keepdims=True)
    feat = jnp.concatenate([avg, mx], axis=1)
    y = lax.conv_general_dilated(
        feat.astype(jnp.float32), weight.astype(jnp.float32),
        window_strides=(1, 1), padding=[(PAD, PAD), (PAD, PAD)],
        dimension_numbers=("NCHW", "OIHW", "NCHW"))
    return jax.nn.sigmoid(y)


if __name__ == "__main__":
    key = jax.random.PRNGKey(0)
    kx, kw = jax.random.split(key)
    N, C, H, W = 2, 4, 16, 16
    x = jax.random.normal(kx, (N, C, H, W), dtype=jnp.float32)
    # deterministic synthetic conv weight, shape (out=1, in=2, 5, 5), no bias
    weight = jax.random.normal(kw, (1, 2, KSIZE, KSIZE), dtype=jnp.float32) * 0.1

    out = spatial_attention(x, weight)
    out = jax.block_until_ready(out)

    ref = _reference(x, weight)
    assert out.shape == (N, 1, H, W)
    np.testing.assert_allclose(np.asarray(out), np.asarray(ref), atol=1e-5, rtol=1e-5)
    print("KERNEL_OK")
</pallas_src>

<mosaic_0001>
module attributes {stable_mosaic.version = 11 : i64} {
  func.func @kernel(%arg0: i32, %arg1: i32, %arg2: memref<1x2x4x256xf32, #tpu.memory_space<vmem>>, %arg3: memref<512x256xf32, #tpu.memory_space<vmem>>, %arg4: memref<1x2x256xf32, #tpu.memory_space<vmem>>, %arg5: memref<2x512xf32, #tpu.memory_space<vmem>>) attributes {dimension_semantics = [#tpu.dimension_semantics<parallel>, #tpu.dimension_semantics<arbitrary>], iteration_bounds = array<i64: 1, 1>, scalar_prefetch = 0 : i64, scratch_operands = 1 : i64, tpu.core_type = #tpu.core_type<tc>, window_params = [{transform_indices = @transform_0, window_bounds = array<i64: 1, 2, 4, 256>}, {pipeline_mode = #tpu.pipeline_mode<synchronous>, transform_indices = @transform_1, window_bounds = array<i64: 512, 256>}, {transform_indices = @transform_2, window_bounds = array<i64: 1, 2, 256>}]} {
    %cst = arith.constant 0.000000e+00 : f32
    %0 = vector.broadcast %cst : f32 to vector<2x256xf32>
    %cst_0 = arith.constant 0xFF800000 : f32
    %1 = vector.broadcast %cst_0 : f32 to vector<2x256xf32>
    %c0 = arith.constant 0 : index
    %c0_1 = arith.constant 0 : index
    %c0_2 = arith.constant 0 : index
    %c0_3 = arith.constant 0 : index
    %2 = vector.load %arg2[%c0, %c0_1, %c0_2, %c0_3] : memref<1x2x4x256xf32, #tpu.memory_space<vmem>>, vector<1x2x1x256xf32>
    %3 = vector.shape_cast %2 : vector<1x2x1x256xf32> to vector<2x256xf32>
    %4 = arith.addf %0, %3 : vector<2x256xf32>
    %5 = arith.maximumf %1, %3 : vector<2x256xf32>
    %c0_4 = arith.constant 0 : index
    %c0_5 = arith.constant 0 : index
    %c1 = arith.constant 1 : index
    %c0_6 = arith.constant 0 : index
    %6 = vector.load %arg2[%c0_4, %c0_5, %c1, %c0_6] : memref<1x2x4x256xf32, #tpu.memory_space<vmem>>, vector<1x2x1x256xf32>
    %7 = vector.shape_cast %6 : vector<1x2x1x256xf32> to vector<2x256xf32>
    %8 = arith.addf %4, %7 : vector<2x256xf32>
    %9 = arith.maximumf %5, %7 : vector<2x256xf32>
    %c0_7 = arith.constant 0 : index
    %c0_8 = arith.constant 0 : index
    %c2 = arith.constant 2 : index
    %c0_9 = arith.constant 0 : index
    %10 = vector.load %arg2[%c0_7, %c0_8, %c2, %c0_9] : memref<1x2x4x256xf32, #tpu.memory_space<vmem>>, vector<1x2x1x256xf32>
    %11 = vector.shape_cast %10 : vector<1x2x1x256xf32> to vector<2x256xf32>
    %12 = arith.addf %8, %11 : vector<2x256xf32>
    %13 = arith.maximumf %9, %11 : vector<2x256xf32>
    %c0_10 = arith.constant 0 : index
    %c0_11 = arith.constant 0 : index
    %c3 = arith.constant 3 : index
    %c0_12 = arith.constant 0 : index
    %14 = vector.load %arg2[%c0_10, %c0_11, %c3, %c0_12] : memref<1x2x4x256xf32, #tpu.memory_space<vmem>>, vector<1x2x1x256xf32>
    %15 = vector.shape_cast %14 : vector<1x2x1x256xf32> to vector<2x256xf32>
    %16 = arith.addf %12, %15 : vector<2x256xf32>
    %17 = arith.maximumf %13, %15 : vector<2x256xf32>
    %c0_i32 = arith.constant 0 : i32
    %18 = arith.cmpi eq, %arg1, %c0_i32 : i32
    %19 = arith.extui %18 : i1 to i32
    %c0_i32_13 = arith.constant 0 : i32
    %20 = arith.cmpi ne, %19, %c0_i32_13 : i32
    scf.if %20 {
      %c0_18 = arith.constant 0 : index
      %c0_19 = arith.constant 0 : index
      %27 = vector.load %arg5[%c0_18, %c0_19] : memref<2x512xf32, #tpu.memory_space<vmem>>, vector<2x256xf32>
      tpu.vector_store %arg5[%c0_18, %c0_19], %16 {strides = array<i32>} : memref<2x512xf32, #tpu.memory_space<vmem>>, vector<2x256xf32>,
      %c0_20 = arith.constant 0 : index
      %c256 = arith.constant 256 : index
      %28 = vector.load %arg5[%c0_20, %c256] : memref<2x512xf32, #tpu.memory_space<vmem>>, vector<2x256xf32>
      tpu.vector_store %arg5[%c0_20, %c256], %17 {strides = array<i32>} : memref<2x512xf32, #tpu.memory_space<vmem>>, vector<2x256xf32>,
    } else {
    }
    %c0_i32_14 = arith.constant 0 : i32
    %21 = arith.cmpi ne, %arg1, %c0_i32_14 : i32
    %22 = arith.extui %21 : i1 to i32
    %c0_i32_15 = arith.constant 0 : i32
    %23 = arith.cmpi ne, %22, %c0_i32_15 : i32
    scf.if %23 {
      %c0_18 = arith.constant 0 : index
      %c0_19 = arith.constant 0 : index
      %27 = vector.load %arg5[%c0_18, %c0_19] : memref<2x512xf32, #tpu.memory_space<vmem>>, vector<2x256xf32>
      %28 = arith.addf %27, %16 : vector<2x256xf32>
      %c0_20 = arith.constant 0 : index
      %c0_21 = arith.constant 0 : index
      %29 = vector.load %arg5[%c0_20, %c0_21] : memref<2x512xf32, #tpu.memory_space<vmem>>, vector<2x256xf32>
      tpu.vector_store %arg5[%c0_20, %c0_21], %28 {strides = array<i32>} : memref<2x512xf32, #tpu.memory_space<vmem>>, vector<2x256xf32>,
      %c0_22 = arith.constant 0 : index
      %c256 = arith.constant 256 : index
      %30 = vector.load %arg5[%c0_22, %c256] : memref<2x512xf32, #tpu.memory_space<vmem>>, vector<2x256xf32>
      %31 = arith.maximumf %30, %17 : vector<2x256xf32>
      %c0_23 = arith.constant 0 : index
      %c256_24 = arith.constant 256 : index
      %32 = vector.load %arg5[%c0_23, %c256_24] : memref<2x512xf32, #tpu.memory_space<vmem>>, vector<2x256xf32>
      tpu.vector_store %arg5[%c0_23, %c256_24], %31 {strides = array<i32>} : memref<2x512xf32, #tpu.memory_space<vmem>>, vector<2x256xf32>,
    } else {
    }
    %c0_i32_16 = arith.constant 0 : i32
    %24 = arith.cmpi eq, %arg1, %c0_i32_16 : i32
    %25 = arith.extui %24 : i1 to i32
    %c0_i32_17 = arith.constant 0 : i32
    %26 = arith.cmpi ne, %25, %c0_i32_17 : i32
    scf.if %26 {
      %c0_18 = arith.constant 0 : index
      %c0_19 = arith.constant 0 : index
      %27 = vector.load %arg5[%c0_18, %c0_19] : memref<2x512xf32, #tpu.memory_space<vmem>>, vector<2x512xf32>
      %c0_20 = arith.constant 0 : index
      %c0_21 = arith.constant 0 : index
      %28 = vector.load %arg3[%c0_20, %c0_21] : memref<512x256xf32, #tpu.memory_space<vmem>>, vector<512x256xf32>
      %cst_22 = arith.constant dense<0.000000e+00> : vector<2x256xf32>
      %29 = tpu.matmul %27, %28, %cst_22 {dimension_numbers = #tpu.dot_dimension_numbers<[1], [0], [0], [1], [0, 0, 1, 1], [], []>} : vector<2x512xf32>, vector<512x256xf32>, vector<2x256xf32> -> vector<2x256xf32>
      %30 = arith.negf %29 : vector<2x256xf32>
      %31 = math.exp %30 : vector<2x256xf32>
      %cst_23 = arith.constant 1.000000e+00 : f32
      %32 = vector.broadcast %cst_23 : f32 to vector<2x256xf32>
      %33 = arith.addf %32, %31 : vector<2x256xf32>
      %34 = arith.divf %32, %33 : vector<2x256xf32>
      %c0_24 = arith.constant 0 : index
      %c0_25 = arith.constant 0 : index
      %c0_26 = arith.constant 0 : index
      %35 = vector.load %arg4[%c0_24, %c0_25, %c0_26] : memref<1x2x256xf32, #tpu.memory_space<vmem>>, vector<1x2x256xf32>
      %36 = vector.shape_cast %35 : vector<1x2x256xf32> to vector<2x256xf32>
      %37 = vector.shape_cast %34 : vector<2x256xf32> to vector<1x2x256xf32>
      tpu.vector_store %arg4[%c0_24, %c0_25, %c0_26], %37 {strides = array<i32>} : memref<1x2x256xf32, #tpu.memory_space<vmem>>, vector<1x2x256xf32>,
    } else {
    }
    return
  }
  func.func @transform_0(%arg0: i32, %arg1: i32) -> (i32, i32, i32, i32) {
    %c0_i32 = arith.constant 0 : i32
    %c0_i32_0 = arith.constant 0 : i32
    %c0_i32_1 = arith.constant 0 : i32
    return %arg0, %c0_i32, %arg1, %c0_i32_0 : i32, i32, i32, i32
  }
  func.func @transform_1(%arg0: i32, %arg1: i32) -> (i32, i32) {
    %c0_i32 = arith.constant 0 : i32
    %c0_i32_0 = arith.constant 0 : i32
    %c0_i32_1 = arith.constant 0 : i32
    return %c0_i32, %c0_i32_0 : i32, i32
  }
  func.func @transform_2(%arg0: i32, %arg1: i32) -> (i32, i32, i32) {
    %c0_i32 = arith.constant 0 : i32
    %c0_i32_0 = arith.constant 0 : i32
    %c0_i32_1 = arith.constant 0 : i32
    return %arg0, %c0_i32, %c0_i32_0 : i32, i32, i32
  }
}

module attributes {stable_mosaic.version = 11 : i64} {
  func.func @kernel(%arg0: i32, %arg1: i32, %arg2: memref<1x2x4x256xf32, #tpu.memory_space<vmem>>, %arg3: memref<512x256xf32, #tpu.memory_space<vmem>>, %arg4: memref<1x2x256xf32, #tpu.memory_space<vmem>>, %arg5: memref<2x512xf32, #tpu.memory_space<vmem>>) attributes {dimension_semantics = [#tpu.dimension_semantics<parallel>, #tpu.dimension_semantics<arbitrary>], iteration_bounds = array<i64: 1, 1>, scalar_prefetch = 0 : i64, scratch_operands = 1 : i64, tpu.core_type = #tpu.core_type<tc>, window_params = [{transform_indices = @transform_0, window_bounds = array<i64: 1, 2, 4, 256>}, {pipeline_mode = #tpu.pipeline_mode<synchronous>, transform_indices = @transform_1, window_bounds = array<i64: 512, 256>}, {transform_indices = @transform_2, window_bounds = array<i64: 1, 2, 256>}]} {
    %cst = arith.constant 0.000000e+00 : f32
    %0 = vector.broadcast %cst : f32 to vector<2x256xf32>
    %cst_0 = arith.constant 0xFF800000 : f32
    %1 = vector.broadcast %cst_0 : f32 to vector<2x256xf32>
    %c0 = arith.constant 0 : index
    %c0_1 = arith.constant 0 : index
    %c0_2 = arith.constant 0 : index
    %c0_3 = arith.constant 0 : index
    %2 = vector.load %arg2[%c0, %c0_1, %c0_2, %c0_3] : memref<1x2x4x256xf32, #tpu.memory_space<vmem>>, vector<1x2x1x256xf32>
    %3 = vector.shape_cast %2 : vector<1x2x1x256xf32> to vector<2x256xf32>
    %4 = arith.addf %0, %3 : vector<2x256xf32>
    %5 = arith.maximumf %1, %3 : vector<2x256xf32>
    %c0_4 = arith.constant 0 : index
    %c0_5 = arith.constant 0 : index
    %c1 = arith.constant 1 : index
    %c0_6 = arith.constant 0 : index
    %6 = vector.load %arg2[%c0_4, %c0_5, %c1, %c0_6] : memref<1x2x4x256xf32, #tpu.memory_space<vmem>>, vector<1x2x1x256xf32>
    %7 = vector.shape_cast %6 : vector<1x2x1x256xf32> to vector<2x256xf32>
    %8 = arith.addf %4, %7 : vector<2x256xf32>
    %9 = arith.maximumf %5, %7 : vector<2x256xf32>
    %c0_7 = arith.constant 0 : index
    %c0_8 = arith.constant 0 : index
    %c2 = arith.constant 2 : index
    %c0_9 = arith.constant 0 : index
    %10 = vector.load %arg2[%c0_7, %c0_8, %c2, %c0_9] : memref<1x2x4x256xf32, #tpu.memory_space<vmem>>, vector<1x2x1x256xf32>
    %11 = vector.shape_cast %10 : vector<1x2x1x256xf32> to vector<2x256xf32>
    %12 = arith.addf %8, %11 : vector<2x256xf32>
    %13 = arith.maximumf %9, %11 : vector<2x256xf32>
    %c0_10 = arith.constant 0 : index
    %c0_11 = arith.constant 0 : index
    %c3 = arith.constant 3 : index
    %c0_12 = arith.constant 0 : index
    %14 = vector.load %arg2[%c0_10, %c0_11, %c3, %c0_12] : memref<1x2x4x256xf32, #tpu.memory_space<vmem>>, vector<1x2x1x256xf32>
    %15 = vector.shape_cast %14 : vector<1x2x1x256xf32> to vector<2x256xf32>
    %16 = arith.addf %12, %15 : vector<2x256xf32>
    %17 = arith.maximumf %13, %15 : vector<2x256xf32>
    %c0_i32 = arith.constant 0 : i32
    %18 = arith.cmpi eq, %arg1, %c0_i32 : i32
    %19 = arith.extui %18 : i1 to i32
    %c0_i32_13 = arith.constant 0 : i32
    %20 = arith.cmpi ne, %19, %c0_i32_13 : i32
    scf.if %20 {
      %c0_18 = arith.constant 0 : index
      %c0_19 = arith.constant 0 : index
      %27 = vector.load %arg5[%c0_18, %c0_19] : memref<2x512xf32, #tpu.memory_space<vmem>>, vector<2x256xf32>
      tpu.vector_store %arg5[%c0_18, %c0_19], %16 {strides = array<i32>} : memref<2x512xf32, #tpu.memory_space<vmem>>, vector<2x256xf32>,
      %c0_20 = arith.constant 0 : index
      %c256 = arith.constant 256 : index
      %28 = vector.load %arg5[%c0_20, %c256] : memref<2x512xf32, #tpu.memory_space<vmem>>, vector<2x256xf32>
      tpu.vector_store %arg5[%c0_20, %c256], %17 {strides = array<i32>} : memref<2x512xf32, #tpu.memory_space<vmem>>, vector<2x256xf32>,
    } else {
    }
    %c0_i32_14 = arith.constant 0 : i32
    %21 = arith.cmpi ne, %arg1, %c0_i32_14 : i32
    %22 = arith.extui %21 : i1 to i32
    %c0_i32_15 = arith.constant 0 : i32
    %23 = arith.cmpi ne, %22, %c0_i32_15 : i32
    scf.if %23 {
      %c0_18 = arith.constant 0 : index
      %c0_19 = arith.constant 0 : index
      %27 = vector.load %arg5[%c0_18, %c0_19] : memref<2x512xf32, #tpu.memory_space<vmem>>, vector<2x256xf32>
      %28 = arith.addf %27, %16 : vector<2x256xf32>
      %c0_20 = arith.constant 0 : index
      %c0_21 = arith.constant 0 : index
      %29 = vector.load %arg5[%c0_20, %c0_21] : memref<2x512xf32, #tpu.memory_space<vmem>>, vector<2x256xf32>
      tpu.vector_store %arg5[%c0_20, %c0_21], %28 {strides = array<i32>} : memref<2x512xf32, #tpu.memory_space<vmem>>, vector<2x256xf32>,
      %c0_22 = arith.constant 0 : index
      %c256 = arith.constant 256 : index
      %30 = vector.load %arg5[%c0_22, %c256] : memref<2x512xf32, #tpu.memory_space<vmem>>, vector<2x256xf32>
      %31 = arith.maximumf %30, %17 : vector<2x256xf32>
      %c0_23 = arith.constant 0 : index
      %c256_24 = arith.constant 256 : index
      %32 = vector.load %arg5[%c0_23, %c256_24] : memref<2x512xf32, #tpu.memory_space<vmem>>, vector<2x256xf32>
      tpu.vector_store %arg5[%c0_23, %c256_24], %31 {strides = array<i32>} : memref<2x512xf32, #tpu.memory_space<vmem>>, vector<2x256xf32>,
    } else {
    }
    %c0_i32_16 = arith.constant 0 : i32
    %24 = arith.cmpi eq, %arg1, %c0_i32_16 : i32
    %25 = arith.extui %24 : i1 to i32
    %c0_i32_17 = arith.constant 0 : i32
    %26 = arith.cmpi ne, %25, %c0_i32_17 : i32
    scf.if %26 {
      %c0_18 = arith.constant 0 : index
      %c0_19 = arith.constant 0 : index
      %27 = vector.load %arg5[%c0_18, %c0_19] : memref<2x512xf32, #tpu.memory_space<vmem>>, vector<2x512xf32>
      %c0_20 = arith.constant 0 : index
      %c0_21 = arith.constant 0 : index
      %28 = vector.load %arg3[%c0_20, %c0_21] : memref<512x256xf32, #tpu.memory_space<vmem>>, vector<512x256xf32>
      %cst_22 = arith.constant dense<0.000000e+00> : vector<2x256xf32>
      %29 = tpu.matmul %27, %28, %cst_22 {dimension_numbers = #tpu.dot_dimension_numbers<[1], [0], [0], [1], [0, 0, 1, 1], [], []>} : vector<2x512xf32>, vector<512x256xf32>, vector<2x256xf32> -> vector<2x256xf32>
      %30 = arith.negf %29 : vector<2x256xf32>
      %31 = math.exp %30 : vector<2x256xf32>
      %cst_23 = arith.constant 1.000000e+00 : f32
      %32 = vector.broadcast %cst_23 : f32 to vector<2x256xf32>
      %33 = arith.addf %32, %31 : vector<2x256xf32>
      %34 = arith.divf %32, %33 : vector<2x256xf32>
      %c0_24 = arith.constant 0 : index
      %c0_25 = arith.constant 0 : index
      %c0_26 = arith.constant 0 : index
      %35 = vector.load %arg4[%c0_24, %c0_25, %c0_26] : memref<1x2x256xf32, #tpu.memory_space<vmem>>, vector<1x2x256xf32>
      %36 = vector.shape_cast %35 : vector<1x2x256xf32> to vector<2x256xf32>
      %37 = vector.shape_cast %34 : vector<2x256xf32> to vector<1x2x256xf32>
      tpu.vector_store %arg4[%c0_24, %c0_25, %c0_26], %37 {strides = array<i32>} : memref<1x2x256xf32, #tpu.memory_space<vmem>>, vector<1x2x256xf32>,
    } else {
    }
    return
  }
  func.func @transform_0(%arg0: i32, %arg1: i32) -> (i32, i32, i32, i32) {
    %c0_i32 = arith.constant 0 : i32
    %c0_i32_0 = arith.constant 0 : i32
    %c0_i32_1 = arith.constant 0 : i32
    return %arg0, %c0_i32, %arg1, %c0_i32_0 : i32, i32, i32, i32
  }
  func.func @transform_1(%arg0: i32, %arg1: i32) -> (i32, i32) {
    %c0_i32 = arith.constant 0 : i32
    %c0_i32_0 = arith.constant 0 : i32
    %c0_i32_1 = arith.constant 0 : i32
    return %c0_i32, %c0_i32_0 : i32, i32
  }
  func.func @transform_2(%arg0: i32, %arg1: i32) -> (i32, i32, i32) {
    %c0_i32 = arith.constant 0 : i32
    %c0_i32_0 = arith.constant 0 : i32
    %c0_i32_1 = arith.constant 0 : i32
    return %arg0, %c0_i32, %c0_i32_0 : i32, i32, i32
  }
}

</mosaic_0001>

<bundles_post_ra>
// kernel: tpu_custom_call.1
= control target key start
LH: loop header
LB: loop body
LE: loop exit
PB: predicated region body
PF: predicated region fallthrough
CT: control target
= control target key end

     0   :  { %7 = vsyncpa [#allocation4], 0  ;;  %s585_s0 = inlined_call_operand.hbm [shape: f32[1,2,4,256], index: 0, kind: input, shape index: {}]   ;;  %s586_s1 = inlined_call_operand.hbm [shape: f32[512,256], index: 1, kind: input, shape index: {}]   ;;  %s587_s2 = inlined_call_operand.hbm [shape: f32[1,2,256], index: 2, kind: output, shape index: {}]  }
   0x1   :  { %8 = vsyncpa [#allocation7], 0 }
   0x2   :  { %9 = vsyncpa [#allocation5], 0  ;;  %s553_s9 = smov [#allocation3]  }
   0x3   :  { %s15_s10 = sshll.u32 %s553_s9, 4  ;;  %s16_s10 = int_to_ptr.vmem [resolvable:$true] %s15_s10 }
   0x4   :  { %s495_s11 = scalar_lea.vmem %s16_s10, 256  ;;  %p500_p1 = scmp.lt.s32.totalorder %s16_s10, %s16_s10 }
   0x5   :  { %p496_p0 = scmp.ne.s32.totalorder %s16_s10, %s495_s11  ;;  %p501_p2 = scmp.lt.s32.totalorder %s495_s11, %s495_s11 }
   0x7   :  { %p502_p3 = por %p501_p2, %p500_p1 }
   0x9   :  { %p503_p4 = pnand %p502_p3, %p496_p0 }
   0xb   :  { %506 = shalt.err (!%p503_p4)
}
   0xc   :  { %s554_s12 = smov 128   ;;  %s555_s13 = smov 8  }
   0xd   :  { %21 = dma.hbm_to_vmem [thread:$0]  %s585_s0, 256, %s16_s10, [#allocation4], %s554_s12, %s554_s12, %s555_s13  }
   0xe   :  { %s556_s16 = smov [#allocation6]  }
   0xf   :  { %s27_s17 = sshll.u32 %s556_s16, 4  ;;  %s28_s17 = int_to_ptr.vmem [resolvable:$true] %s27_s17 }
  0x10   :  { %s515_s18 = scalar_lea.vmem %s28_s17, 16384  ;;  %p520_p6 = scmp.lt.s32.totalorder %s28_s17, %s28_s17 }
  0x11   :  { %p516_p5 = scmp.ne.s32.totalorder %s28_s17, %s515_s18  ;;  %p521_p7 = scmp.lt.s32.totalorder %s515_s18, %s515_s18 }
  0x13   :  { %p522_p8 = por %p521_p7, %p520_p6 }
  0x15   :  { %p523_p9 = pnand %p522_p8, %p516_p5 }
  0x17   :  { %526 = shalt.err (!%p523_p9)
}
  0x18   :  { %s557_s19 = smov 256   ;;  %s558_s20 = smov 16  }
  0x19   :  { %33 = dma.hbm_to_vmem [thread:$0]  %s586_s1, 16384, %s28_s17, [#allocation7], %s557_s19, %s557_s19, %s558_s20  }
  0x1a   :  { %547 = dma.done.wait [#allocation4], 256  }
  0x1b   :  { %548 = vsyncadd [#allocation4], 4294967040 }
  0x1c   :  { %549 = dma.done.wait [#allocation7], 16384  }
  0x1d   :  { %550 = vsyncadd [#allocation7], 4294950912  ;;  %v164_v0 = vld [vmem:[#allocation6 + $0xf8] sm:$0xff]  ;;  %v163_v2 = vld [vmem:[#allocation6 + $0xf0] sm:$0xff]  ;;  %s560_s0 = smov [#allocation8]  }
  0x1e   :  { %v228_v1 = vld [vmem:[#allocation6 + $0x2f8] sm:$0xff]  ;;  %283 = vmatprep.subr.mxu0 %v164_v0  ;;  %v227_v3 = vld [vmem:[#allocation6 + $0x2f0] sm:$0xff]  ;;  %v162_v4 = vld [vmem:[#allocation6 + $0xe8] sm:$0xff]  ;;  %s455_s1 = sshll.u32 %s560_s0, 4  ;;  %s456_s1 = int_to_ptr.vmem [resolvable:$true] %s455_s1 }
  0x1f   :  { %354 = vmatprep.subr.mxu1 %v228_v1  ;;  %v226_v5 = vld [vmem:[#allocation6 + $0x2e8] sm:$0xff]  ;;  %284 = vmatpush1.msra.mxu0 %v163_v2  ;;  %v161_v6 = vld [vmem:[#allocation6 + $0xe0] sm:$0xff]  ;;  %v160_v8 = vld [vmem:[#allocation6 + $0xd8] sm:$0xff]  ;;  %s527_s23 = scalar_lea.vmem %s456_s1, 64  ;;  %p532_p11 = scmp.lt.s32.totalorder %s456_s1, %s456_s1 }
  0x20   :  { %355 = vmatpush1.msra.mxu1 %v227_v3  ;;  %v225_v7 = vld [vmem:[#allocation6 + $0x2e0] sm:$0xff]  ;;  %285 = vmatprep.subr.mxu0 %v162_v4  ;;  %v224_v9 = vld [vmem:[#allocation6 + $0x2d8] sm:$0xff]  ;;  %v159_v10 = vld [vmem:[#allocation6 + $0xd0] sm:$0xff]  ;;  %p528_p10 = scmp.ne.s32.totalorder %s456_s1, %s527_s23  ;;  %p533_p12 = scmp.lt.s32.totalorder %s527_s23, %s527_s23 }
  0x21   :  { %356 = vmatprep.subr.mxu1 %v226_v5  ;;  %v223_v11 = vld [vmem:[#allocation6 + $0x2d0] sm:$0xff]  ;;  %286 = vmatpush1.msra.mxu0 %v161_v6  ;;  %v158_v12 = vld [vmem:[#allocation6 + $0xc8] sm:$0xff]  ;;  %v157_v14 = vld [vmem:[#allocation6 + $0xc0] sm:$0xff] }
  0x22   :  { %357 = vmatpush1.msra.mxu1 %v225_v7  ;;  %v222_v13 = vld [vmem:[#allocation6 + $0x2c8] sm:$0xff]  ;;  %287 = vmatprep.subr.mxu0 %v160_v8  ;;  %v221_v15 = vld [vmem:[#allocation6 + $0x2c0] sm:$0xff]  ;;  %v156_v16 = vld [vmem:[#allocation6 + $0xb8] sm:$0xff]  ;;  %p534_p13 = por %p533_p12, %p532_p11 }
  0x23   :  { %358 = vmatprep.subr.mxu1 %v224_v9  ;;  %288 = vmatpush1.msra.mxu0 %v159_v10  ;;  %v220_v17 = vld [vmem:[#allocation6 + $0x2b8] sm:$0xff]  ;;  %v155_v18 = vld [vmem:[#allocation6 + $0xb0] sm:$0xff]  ;;  %v154_v20 = vld [vmem:[#allocation6 + $0xa8] sm:$0xff] }
  0x24   :  { %359 = vmatpush1.msra.mxu1 %v223_v11  ;;  %289 = vmatprep.subr.mxu0 %v158_v12  ;;  %v219_v19 = vld [vmem:[#allocation6 + $0x2b0] sm:$0xff]  ;;  %v218_v21 = vld [vmem:[#allocation6 + $0x2a8] sm:$0xff]  ;;  %v153_v22 = vld [vmem:[#allocation6 + $0xa0] sm:$0xff]  ;;  %p535_p0 = pnand %p534_p13, %p528_p10 }
  0x25   :  { %360 = vmatprep.subr.mxu1 %v222_v13  ;;  %290 = vmatpush1.msra.mxu0 %v157_v14  ;;  %v217_v23 = vld [vmem:[#allocation6 + $0x2a0] sm:$0xff]  ;;  %v152_v24 = vld [vmem:[#allocation6 + $0x98] sm:$0xff]  ;;  %v151_v26 = vld [vmem:[#allocation6 + $0x90] sm:$0xff] }
  0x26   :  { %361 = vmatpush1.msra.mxu1 %v221_v15  ;;  %291 = vmatprep.subr.mxu0 %v156_v16  ;;  %v216_v25 = vld [vmem:[#allocation6 + $0x298] sm:$0xff]  ;;  %v215_v27 = vld [vmem:[#allocation6 + $0x290] sm:$0xff]  ;;  %v150_v28 = vld [vmem:[#allocation6 + $0x88] sm:$0xff] }
  0x27   :  { %362 = vmatprep.subr.mxu1 %v220_v17  ;;  %292 = vmatpush1.msra.mxu0 %v155_v18  ;;  %v214_v29 = vld [vmem:[#allocation6 + $0x288] sm:$0xff]  ;;  %v149_v30 = vld [vmem:[#allocation6 + $0x80] sm:$0xff]  ;;  %v148_v32 = vld [vmem:[#allocation6 + $0x78] sm:$0xff] }
  0x28   :  { %363 = vmatpush1.msra.mxu1 %v219_v19  ;;  %293 = vmatprep.subr.mxu0 %v154_v20  ;;  %v213_v31 = vld [vmem:[#allocation6 + $0x280] sm:$0xff]  ;;  %v212_v33 = vld [vmem:[#allocation6 + $0x278] sm:$0xff]  ;;  %v147_v34 = vld [vmem:[#allocation6 + $0x70] sm:$0xff] }
  0x29   :  { %364 = vmatprep.subr.mxu1 %v218_v21  ;;  %294 = vmatpush1.msra.mxu0 %v153_v22  ;;  %v211_v35 = vld [vmem:[#allocation6 + $0x270] sm:$0xff]  ;;  %v146_v36 = vld [vmem:[#allocation6 + $0x68] sm:$0xff]  ;;  %v145_v38 = vld [vmem:[#allocation6 + $0x60] sm:$0xff] }
  0x2a   :  { %365 = vmatpush1.msra.mxu1 %v217_v23  ;;  %295 = vmatprep.subr.mxu0 %v152_v24  ;;  %v210_v37 = vld [vmem:[#allocation6 + $0x268] sm:$0xff]  ;;  %v209_v39 = vld [vmem:[#allocation6 + $0x260] sm:$0xff]  ;;  %v144_v40 = vld [vmem:[#allocation6 + $0x58] sm:$0xff] }
  0x2b   :  { %366 = vmatprep.subr.mxu1 %v216_v25  ;;  %296 = vmatpush1.msra.mxu0 %v151_v26  ;;  %v208_v41 = vld [vmem:[#allocation6 + $0x258] sm:$0xff]  ;;  %v143_v42 = vld [vmem:[#allocation6 + $0x50] sm:$0xff]  ;;  %v142_v44 = vld [vmem:[#allocation6 + $0x48] sm:$0xff] }
  0x2c   :  { %367 = vmatpush1.msra.mxu1 %v215_v27  ;;  %297 = vmatprep.subr.mxu0 %v150_v28  ;;  %v207_v43 = vld [vmem:[#allocation6 + $0x250] sm:$0xff]  ;;  %v206_v45 = vld [vmem:[#allocation6 + $0x248] sm:$0xff]  ;;  %v141_v46 = vld [vmem:[#allocation6 + $0x40] sm:$0xff] }
  0x2d   :  { %368 = vmatprep.subr.mxu1 %v214_v29  ;;  %298 = vmatpush1.msra.mxu0 %v149_v30  ;;  %v205_v47 = vld [vmem:[#allocation6 + $0x240] sm:$0xff]  ;;  %v140_v48 = vld [vmem:[#allocation6 + $0x38] sm:$0xff]  ;;  %v139_v50 = vld [vmem:[#allocation6 + $0x30] sm:$0xff] }
  0x2e   :  { %369 = vmatpush1.msra.mxu1 %v213_v31  ;;  %299 = vmatprep.subr.mxu0 %v148_v32  ;;  %v204_v49 = vld [vmem:[#allocation6 + $0x238] sm:$0xff]  ;;  %v203_v51 = vld [vmem:[#allocation6 + $0x230] sm:$0xff]  ;;  %v138_v52 = vld [vmem:[#allocation6 + $0x28] sm:$0xff] }
  0x2f   :  { %370 = vmatprep.subr.mxu1 %v212_v33  ;;  %300 = vmatpush1.msra.mxu0 %v147_v34  ;;  %v202_v53 = vld [vmem:[#allocation6 + $0x228] sm:$0xff]  ;;  %v137_v54 = vld [vmem:[#allocation6 + $0x20] sm:$0xff]  ;;  %v136_v56 = vld [vmem:[#allocation6 + $0x18] sm:$0xff] }
  0x30   :  { %371 = vmatpush1.msra.mxu1 %v211_v35  ;;  %301 = vmatprep.subr.mxu0 %v146_v36  ;;  %v201_v55 = vld [vmem:[#allocation6 + $0x220] sm:$0xff]  ;;  %v200_v57 = vld [vmem:[#allocation6 + $0x218] sm:$0xff]  ;;  %v135_v58 = vld [vmem:[#allocation6 + $0x10] sm:$0xff] }
  0x31   :  { %372 = vmatprep.subr.mxu1 %v210_v37  ;;  %302 = vmatpush1.msra.mxu0 %v145_v38  ;;  %v199_v59 = vld [vmem:[#allocation6 + $0x210] sm:$0xff]  ;;  %v134_v60 = vld [vmem:[#allocation6 + $0x8] sm:$0xff]  ;;  %v133_v62 = vld [vmem:[#allocation6] sm:$0xff] }
  0x32   :  { %373 = vmatpush1.msra.mxu1 %v209_v39  ;;  %303 = vmatprep.subr.mxu0 %v144_v40  ;;  %v198_v61 = vld [vmem:[#allocation6 + $0x208] sm:$0xff]  ;;  %v197_v63 = vld [vmem:[#allocation6 + $0x200] sm:$0xff]  ;;  %v196_v0 = vld [vmem:[#allocation6 + $0x1f8] sm:$0xff] }
  0x33   :  { %374 = vmatprep.subr.mxu1 %v208_v41  ;;  %304 = vmatpush1.msra.mxu0 %v143_v42  ;;  %v260_v1 = vld [vmem:[#allocation6 + $0x3f8] sm:$0xff]  ;;  %v195_v2 = vld [vmem:[#allocation6 + $0x1f0] sm:$0xff]  ;;  %v194_v4 = vld [vmem:[#allocation6 + $0x1e8] sm:$0xff] }
  0x34   :  { %375 = vmatpush1.msra.mxu1 %v207_v43  ;;  %305 = vmatprep.subr.mxu0 %v142_v44  ;;  %v259_v3 = vld [vmem:[#allocation6 + $0x3f0] sm:$0xff]  ;;  %v258_v5 = vld [vmem:[#allocation6 + $0x3e8] sm:$0xff]  ;;  %v193_v6 = vld [vmem:[#allocation6 + $0x1e0] sm:$0xff] }
  0x35   :  { %376 = vmatprep.subr.mxu1 %v206_v45  ;;  %306 = vmatpush1.msra.mxu0 %v141_v46  ;;  %v257_v7 = vld [vmem:[#allocation6 + $0x3e0] sm:$0xff]  ;;  %v192_v8 = vld [vmem:[#allocation6 + $0x1d8] sm:$0xff]  ;;  %v191_v10 = vld [vmem:[#allocation6 + $0x1d0] sm:$0xff] }
  0x36   :  { %377 = vmatpush1.msra.mxu1 %v205_v47  ;;  %307 = vmatprep.subr.mxu0 %v140_v48  ;;  %v256_v9 = vld [vmem:[#allocation6 + $0x3d8] sm:$0xff]  ;;  %v255_v11 = vld [vmem:[#allocation6 + $0x3d0] sm:$0xff]  ;;  %v190_v12 = vld [vmem:[#allocation6 + $0x1c8] sm:$0xff] }
  0x37   :  { %378 = vmatprep.subr.mxu1 %v204_v49  ;;  %308 = vmatpush1.msra.mxu0 %v139_v50  ;;  %v254_v13 = vld [vmem:[#allocation6 + $0x3c8] sm:$0xff]  ;;  %v189_v14 = vld [vmem:[#allocation6 + $0x1c0] sm:$0xff]  ;;  %v188_v16 = vld [vmem:[#allocation6 + $0x1b8] sm:$0xff] }
  0x38   :  { %379 = vmatpush1.msra.mxu1 %v203_v51  ;;  %309 = vmatprep.subr.mxu0 %v138_v52  ;;  %v253_v15 = vld [vmem:[#allocation6 + $0x3c0] sm:$0xff]  ;;  %v252_v17 = vld [vmem:[#allocation6 + $0x3b8] sm:$0xff]  ;;  %v187_v18 = vld [vmem:[#allocation6 + $0x1b0] sm:$0xff] }
  0x39   :  { %380 = vmatprep.subr.mxu1 %v202_v53  ;;  %310 = vmatpush1.msra.mxu0 %v137_v54  ;;  %v251_v19 = vld [vmem:[#allocation6 + $0x3b0] sm:$0xff]  ;;  %v186_v20 = vld [vmem:[#allocation6 + $0x1a8] sm:$0xff]  ;;  %v185_v22 = vld [vmem:[#allocation6 + $0x1a0] sm:$0xff] }
  0x3a   :  { %381 = vmatpush1.msra.mxu1 %v201_v55  ;;  %311 = vmatprep.subr.mxu0 %v136_v56  ;;  %v250_v21 = vld [vmem:[#allocation6 + $0x3a8] sm:$0xff]  ;;  %v249_v23 = vld [vmem:[#allocation6 + $0x3a0] sm:$0xff]  ;;  %v184_v24 = vld [vmem:[#allocation6 + $0x198] sm:$0xff] }
  0x3b   :  { %382 = vmatprep.subr.mxu1 %v200_v57  ;;  %312 = vmatpush1.msra.mxu0 %v135_v58  ;;  %v248_v25 = vld [vmem:[#allocation6 + $0x398] sm:$0xff]  ;;  %v183_v26 = vld [vmem:[#allocation6 + $0x190] sm:$0xff]  ;;  %v182_v28 = vld [vmem:[#allocation6 + $0x188] sm:$0xff] }
  0x3c   :  { %383 = vmatpush1.msra.mxu1 %v199_v59  ;;  %313 = vmatprep.subr.mxu0 %v134_v60  ;;  %v247_v27 = vld [vmem:[#allocation6 + $0x390] sm:$0xff]  ;;  %v246_v29 = vld [vmem:[#allocation6 + $0x388] sm:$0xff]  ;;  %v181_v31 = vld [vmem:[#allocation6 + $0x180] sm:$0xff]  ;;  %v559_v60 = vmov 1983009808  }
  0x3d   :  { %384 = vmatprep.subr.mxu1 %v198_v61  ;;  %314 = vmatpush1.msra.mxu0 %v133_v62  ;;  %v40_v30 = vld [vmem:[#allocation3] ss:$4 sm:$0x3]  ;;  %v245_v32 = vld [vmem:[#allocation6 + $0x380] sm:$0xff]  ;;  %v180_v43 = vld [vmem:[#allocation6 + $0x178] sm:$0xff]  ;;  %v264_v61 = vunpack.c.l.s4 %v559_v60  ;;  %v266_v62 = vlaneseq }
  0x3e   :  { %385 = vmatpush1.msra.mxu1 %v197_v63  ;;  %315 = vmatprep.subr.mxu0 %v196_v0  ;;  %v42_v33 = vld [vmem:[#allocation3 + $0x8] ss:$4 sm:$0x3]  ;;  %v46_v34 = vld [vmem:[#allocation3 + $0x1] ss:$4 sm:$0x3] }
  0x3f   :  { %386 = vmatprep.subr.mxu1 %v260_v1  ;;  %316 = vmatpush2.msra.mxu0 %v195_v2  ;;  %v48_v35 = vld [vmem:[#allocation3 + $0x9] ss:$4 sm:$0x3]  ;;  %v49_v36 = vadd.f32 %v46_v34, %v40_v30  ;;  %v51_v37 = vmax.f32 %v40_v30, %v46_v34  ;;  %v54_v38 = vld [vmem:[#allocation3 + $0x2] ss:$4 sm:$0x3] }
  0x40   :  { %387 = vmatpush2.msra.mxu1 %v259_v3  ;;  %317 = vmatprep.subr.mxu0 %v194_v4  ;;  %v50_v39 = vadd.f32 %v48_v35, %v42_v33  ;;  %v52_v40 = vmax.f32 %v42_v33, %v48_v35  ;;  %v56_v41 = vld [vmem:[#allocation3 + $0xa] ss:$4 sm:$0x3]  ;;  %v62_v42 = vld [vmem:[#allocation3 + $0x3] ss:$4 sm:$0x3] }
  0x41   :  { %388 = vmatprep.subr.mxu1 %v258_v5  ;;  %318 = vmatpush2.msra.mxu0 %v193_v6  ;;  %v244_v44 = vld [vmem:[#allocation6 + $0x378] sm:$0xff]  ;;  %v57_v45 = vadd.f32 %v54_v38, %v49_v36  ;;  %v59_v46 = vmax.f32 %v51_v37, %v54_v38  ;;  %v179_v48 = vld [vmem:[#allocation6 + $0x170] sm:$0xff]  ;;  %v178_v52 = vld [vmem:[#allocation6 + $0x168] sm:$0xff] }
  0x42   :  { %389 = vmatpush2.msra.mxu1 %v257_v7  ;;  %319 = vmatprep.subr.mxu0 %v192_v8  ;;  %v64_v47 = vld [vmem:[#allocation3 + $0xb] ss:$4 sm:$0x3]  ;;  %v243_v49 = vld [vmem:[#allocation6 + $0x370] sm:$0xff]  ;;  %v58_v50 = vadd.f32 %v56_v41, %v50_v39  ;;  %v60_v51 = vmax.f32 %v52_v40, %v56_v41  ;;  %v242_v53 = vld [vmem:[#allocation6 + $0x368] sm:$0xff] }
  0x43   :  { %390 = vmatprep.subr.mxu1 %v256_v9  ;;  %320 = vmatpush2.msra.mxu0 %v191_v10  ;;  %v65_v54 = vadd.f32 %v62_v42, %v57_v45  ;;  %v67_v55 = vmax.f32 %v59_v46, %v62_v42  ;;  %v177_v56 = vld [vmem:[#allocation6 + $0x160] sm:$0xff]  ;;  %v176_v63 = vld [vmem:[#allocation6 + $0x158] sm:$0xff]  ;;  %v175_v1 = vld [vmem:[#allocation6 + $0x150] sm:$0xff]  ;;  %v265_v9 = vunpack.c.0.s8 %v264_v61  ;;  %v267_v10 = vshrl.u32 %v266_v62, 7 }
  0x44   :  { %391 = vmatpush2.msra.mxu1 %v255_v11  ;;  %321 = vmatprep.subr.mxu0 %v190_v12  ;;  %v241_v57 = vld [vmem:[#allocation6 + $0x360] sm:$0xff]  ;;  %v66_v58 = vadd.f32 %v64_v47, %v58_v50  ;;  %v68_v59 = vmax.f32 %v60_v51, %v64_v47  ;;  %v240_v0 = vld [vmem:[#allocation6 + $0x358] sm:$0xff]  ;;  %v239_v2 = vld [vmem:[#allocation6 + $0x350] sm:$0xff] }
  0x45   :  { %392 = vmatprep.subr.mxu1 %v254_v13  ;;  %322 = vmatpush2.msra.mxu0 %v189_v14  ;;  %v174_v5 = vld [vmem:[#allocation6 + $0x148] sm:$0xff]  ;;  %v173_v7 = vld [vmem:[#allocation6 + $0x140] sm:$0xff]  ;;  %v172_v11 = vld [vmem:[#allocation6 + $0x138] sm:$0xff] }
  0x46   :  { %393 = vmatpush2.msra.mxu1 %v253_v15  ;;  %323 = vmatprep.subr.mxu0 %v188_v16  ;;  %v75_v3 = vcombine.low %v65_v54, %v66_v58  ;;  %v87_v4 = vcombine.low %v67_v55, %v68_v59  ;;  %v238_v6 = vld [vmem:[#allocation6 + $0x348] sm:$0xff]  ;;  %v237_v8 = vld [vmem:[#allocation6 + $0x340] sm:$0xff]  ;;  %v236_v12 = vld [vmem:[#allocation6 + $0x338] sm:$0xff] }
  0x47   :  { %394 = vmatprep.subr.mxu1 %v252_v17  ;;  %324 = vmatpush2.msra.mxu0 %v187_v18  ;;  %v171_v13 = vld [vmem:[#allocation6 + $0x130] sm:$0xff]  ;;  %v170_v15 = vld [vmem:[#allocation6 + $0x128] sm:$0xff]  ;;  %v169_v17 = vld [vmem:[#allocation6 + $0x120] sm:$0xff] }
  0x48   :  { %395 = vmatpush2.msra.mxu1 %v251_v19  ;;  %325 = vmatprep.subr.mxu0 %v186_v20  ;;  %465 = vst.sshfl [vmem:[#allocation2] sm:$0x33 pattern:$0x75316420] %v75_v3  ;;  %v235_v14 = vld [vmem:[#allocation6 + $0x330] sm:$0xff]  ;;  %v234_v16 = vld [vmem:[#allocation6 + $0x328] sm:$0xff]  ;;  %v268_v19 = vsub.s32 %v265_v9, %v267_v10 }
  0x49   :  { %396 = vmatprep.subr.mxu1 %v250_v21  ;;  %326 = vmatpush2.msra.mxu0 %v185_v22  ;;  %466 = vst.sshfl [vmem:[#allocation2 + $0x4] sm:$0x33 pattern:$0x75316420] %v87_v4  ;;  %v233_v18 = vld [vmem:[#allocation6 + $0x320] sm:$0xff]  ;;  %v168_v20 = vld [vmem:[#allocation6 + $0x118] sm:$0xff] }
  0x4a   :  { %397 = vmatpush2.msra.mxu1 %v249_v23  ;;  %327 = vmatprep.subr.mxu0 %v184_v24  ;;  %v232_v21 = vld [vmem:[#allocation6 + $0x318] sm:$0xff]  ;;  %v167_v22 = vld [vmem:[#allocation6 + $0x110] sm:$0xff]  ;;  %v166_v24 = vld [vmem:[#allocation6 + $0x108] sm:$0xff] }
  0x4b   :  { %398 = vmatprep.subr.mxu1 %v248_v25  ;;  %328 = vmatpush2.msra.mxu0 %v183_v26  ;;  %v231_v23 = vld [vmem:[#allocation6 + $0x310] sm:$0xff]  ;;  %v230_v25 = vld [vmem:[#allocation6 + $0x308] sm:$0xff] }
  0x4c   :  { %399 = vmatpush2.msra.mxu1 %v247_v27  ;;  %329 = vmatprep.subr.mxu0 %v182_v28  ;;  %v165_v27 = vld [vmem:[#allocation6 + $0x100] sm:$0xff] }
  0x4d   :  { %400 = vmatprep.subr.mxu1 %v246_v29  ;;  %330 = vmatpush2.msra.mxu0 %v181_v31  ;;  %v229_v29 = vld [vmem:[#allocation6 + $0x300] sm:$0xff] }
  0x4e   :  { %401 = vmatpush2.msra.mxu1 %v245_v32  ;;  %331 = vmatprep.subr.mxu0 %v180_v43 }
  0x4f   :  { %402 = vmatprep.subr.mxu1 %v244_v44  ;;  %332 = vmatpush2.msra.mxu0 %v179_v48 }
  0x50   :  { %403 = vmatpush2.msra.mxu1 %v243_v49  ;;  %333 = vmatprep.subr.mxu0 %v178_v52  ;;  %v132_v26 = vld [vmem:[#allocation2] sm:$0xff] }
  0x51   :  { %404 = vmatprep.subr.mxu1 %v242_v53  ;;  %334 = vmatpush2.msra.mxu0 %v177_v56  ;;  %v269_v28 = vrot.slane %v132_v26, %v268_v19  ;;  %v262_v30 = vcombine.high %v132_v26, %v132_v26 }
  0x52   :  { %405 = vmatpush2.msra.mxu1 %v241_v57  ;;  %335 = vmatprep.subr.mxu0 %v176_v63 }
  0x53   :  { %406 = vmatprep.subr.mxu1 %v240_v0  ;;  %336 = vmatpush2.msra.mxu0 %v175_v1  ;;  %v277_v31 = vcombine.high %v269_v28, %v269_v28  ;;  %v276_v32 = vrot.slane %v262_v30, %v268_v19 }
  0x54   :  { %407 = vmatpush2.msra.mxu1 %v239_v2  ;;  %337 = vmatprep.subr.mxu0 %v174_v5 }
  0x55   :  { %408 = vmatprep.subr.mxu1 %v238_v6  ;;  %338 = vmatpush2.msra.mxu0 %v173_v7  ;;  %v278_v33 = vcombine.high %v276_v32, %v276_v32 }
  0x56   :  { %409 = vmatpush2.msra.mxu1 %v237_v8  ;;  %339 = vmatprep.subr.mxu0 %v172_v11 }
  0x57   :  { %410 = vmatprep.subr.mxu1 %v236_v12  ;;  %340 = vmatpush2.msra.mxu0 %v171_v13 }
  0x58   :  { %411 = vmatpush2.msra.mxu1 %v235_v14  ;;  %341 = vmatprep.subr.mxu0 %v170_v15 }
  0x59   :  { %412 = vmatprep.subr.mxu1 %v234_v16  ;;  %342 = vmatpush2.msra.mxu0 %v169_v17 }
  0x5a   :  { %413 = vmatpush2.msra.mxu1 %v233_v18  ;;  %343 = vmatprep.subr.mxu0 %v168_v20 }
  0x5b   :  { %414 = vmatprep.subr.mxu1 %v232_v21  ;;  %344 = vmatpush2.msra.mxu0 %v167_v22 }
  0x5c   :  { %415 = vmatpush2.msra.mxu1 %v231_v23  ;;  %345 = vmatprep.subr.mxu0 %v166_v24 }
  0x5d   :  { %416 = vmatprep.subr.mxu1 %v230_v25  ;;  %346 = vmatpush2.msra.mxu0 %v165_v27 }
  0x5e   :  { %417 = vmatpush2.msra.mxu1 %v229_v29  ;;  %347 = vmatprep.mubr.f32.mxu0 %v277_v31 }
  0x5f   :  { %348 = vmatmul.mubr.f32.vlgmr.msra.gmra.mxu0 %v269_v28  ;;  %418 = vmatprep.mubr.f32.mxu1 %v278_v33 }
  0x60   :  { %419 = vmatmul.mubr.f32.vlgmr.msra.gmra.mxu1 %v276_v32 }
 0x11f   :  { %v349_v34 = vpop.f32.mrf.mxu0 }
 0x120   :  { %v420_v35 = vpop.f32.mrf.mxu1 }
 0x121   :  { %v351_v36 = vpop.f32.mrf.mxu0  ;;  %v421_v37 = vadd.f32 %v420_v35, %v349_v34 }
 0x122   :  { %v422_v38 = vpop.f32.mrf.mxu1 }
 0x123   :  { %v467_v39 = vmul.f32 -1.442695, %v421_v37  ;;  %v423_v40 = vadd.f32 %v422_v38, %v351_v36 }
 0x125   :  { %479 = vpow2.f32 %v467_v39  ;;  %v468_v41 = vmul.f32 -1.442695, %v423_v40 }
 0x127   :  { %481 = vpow2.f32 %v468_v41 }
 0x132   :  { %v480_v42 = vpop.eup %479 }
 0x133   :  { %v431_v43 = vadd.f32 1.0, %v480_v42 }
 0x134   :  { %v482_v44 = vpop.eup %481 }
 0x135   :  { %v432_v45 = vadd.f32 1.0, %v482_v44  ;;  %483 = vrcp.f32 %v431_v43 }
 0x137   :  { %485 = vrcp.f32 %v432_v45 }
 0x142   :  { %v484_v46 = vpop.eup %483 }
 0x144   :  { %v486_v47 = vpop.eup %485 }
 0x145   :  { %v439_v48 = vcombine.low %v484_v46, %v486_v47 }
 0x147   :  { %469 = vst.sshfl [vmem:[#allocation8] sm:$0x33 pattern:$0x76325410] %v439_v48 }
 0x148   :  { %538 = shalt.err (!%p535_p0)
}
 0x149   :  { %458 = dma.vmem_to_hbm [thread:$0]  %s456_s1, 64, %s587_s2, [#allocation5]  }
 0x14a   :  { %551 = dma.done.wait [#allocation5], 64  }
 0x14b   :  { %552 = vsyncadd [#allocation5], 4294967232 }
 0x14c   :  { %462 = vsyncpa [#allocation4], 1 }
 0x14d   :  { %463 = vsyncpa [#allocation7], 1 }
 0x14e   :  { %464 = vsyncpa [#allocation5], 1 }

// kernel: tpu_custom_call.1
= control target key start
LH: loop header
LB: loop body
LE: loop exit
PB: predicated region body
PF: predicated region fallthrough
CT: control target
= control target key end

     0   :  { %7 = vsyncpa [#allocation4], 0  ;;  %s585_s0 = inlined_call_operand.hbm [shape: f32[1,2,4,256], index: 0, kind: input, shape index: {}]   ;;  %s586_s1 = inlined_call_operand.hbm [shape: f32[512,256], index: 1, kind: input, shape index: {}]   ;;  %s587_s2 = inlined_call_operand.hbm [shape: f32[1,2,256], index: 2, kind: output, shape index: {}]  }
   0x1   :  { %8 = vsyncpa [#allocation7], 0 }
   0x2   :  { %9 = vsyncpa [#allocation5], 0  ;;  %s553_s9 = smov [#allocation3]  }
   0x3   :  { %s15_s10 = sshll.u32 %s553_s9, 4  ;;  %s16_s10 = int_to_ptr.vmem [resolvable:$true] %s15_s10 }
   0x4   :  { %s495_s11 = scalar_lea.vmem %s16_s10, 256  ;;  %p500_p1 = scmp.lt.s32.totalorder %s16_s10, %s16_s10 }
   0x5   :  { %p496_p0 = scmp.ne.s32.totalorder %s16_s10, %s495_s11  ;;  %p501_p2 = scmp.lt.s32.totalorder %s495_s11, %s495_s11 }
   0x7   :  { %p502_p3 = por %p501_p2, %p500_p1 }
   0x9   :  { %p503_p4 = pnand %p502_p3, %p496_p0 }
   0xb   :  { %506 = shalt.err (!%p503_p4)
}
   0xc   :  { %s554_s12 = smov 128   ;;  %s555_s13 = smov 8  }
   0xd   :  { %21 = dma.hbm_to_vmem [thread:$0]  %s585_s0, 256, %s16_s10, [#allocation4], %s554_s12, %s554_s12, %s555_s13  }
   0xe   :  { %s556_s16 = smov [#allocation6]  }
   0xf   :  { %s27_s17 = sshll.u32 %s556_s16, 4  ;;  %s28_s17 = int_to_ptr.vmem [resolvable:$true] %s27_s17 }
  0x10   :  { %s515_s18 = scalar_lea.vmem %s28_s17, 16384  ;;  %p520_p6 = scmp.lt.s32.totalorder %s28_s17, %s28_s17 }
  0x11   :  { %p516_p5 = scmp.ne.s32.totalorder %s28_s17, %s515_s18  ;;  %p521_p7 = scmp.lt.s32.totalorder %s515_s18, %s515_s18 }
  0x13   :  { %p522_p8 = por %p521_p7, %p520_p6 }
  0x15   :  { %p523_p9 = pnand %p522_p8, %p516_p5 }
  0x17   :  { %526 = shalt.err (!%p523_p9)
}
  0x18   :  { %s557_s19 = smov 256   ;;  %s558_s20 = smov 16  }
  0x19   :  { %33 = dma.hbm_to_vmem [thread:$0]  %s586_s1, 16384, %s28_s17, [#allocation7], %s557_s19, %s557_s19, %s558_s20  }
  0x1a   :  { %547 = dma.done.wait [#allocation4], 256  }
  0x1b   :  { %548 = vsyncadd [#allocation4], 4294967040 }
  0x1c   :  { %549 = dma.done.wait [#allocation7], 16384  }
  0x1d   :  { %550 = vsyncadd [#allocation7], 4294950912  ;;  %v164_v0 = vld [vmem:[#allocation6 + $0xf8] sm:$0xff]  ;;  %v163_v2 = vld [vmem:[#allocation6 + $0xf0] sm:$0xff]  ;;  %s560_s0 = smov [#allocation8]  }
  0x1e   :  { %v228_v1 = vld [vmem:[#allocation6 + $0x2f8] sm:$0xff]  ;;  %283 = vmatprep.subr.mxu0 %v164_v0  ;;  %v227_v3 = vld [vmem:[#allocation6 + $0x2f0] sm:$0xff]  ;;  %v162_v4 = vld [vmem:[#allocation6 + $0xe8] sm:$0xff]  ;;  %s455_s1 = sshll.u32 %s560_s0, 4  ;;  %s456_s1 = int_to_ptr.vmem [resolvable:$true] %s455_s1 }
  0x1f   :  { %354 = vmatprep.subr.mxu1 %v228_v1  ;;  %v226_v5 = vld [vmem:[#allocation6 + $0x2e8] sm:$0xff]  ;;  %284 = vmatpush1.msra.mxu0 %v163_v2  ;;  %v161_v6 = vld [vmem:[#allocation6 + $0xe0] sm:$0xff]  ;;  %v160_v8 = vld [vmem:[#allocation6 + $0xd8] sm:$0xff]  ;;  %s527_s23 = scalar_lea.vmem %s456_s1, 64  ;;  %p532_p11 = scmp.lt.s32.totalorder %s456_s1, %s456_s1 }
  0x20   :  { %355 = vmatpush1.msra.mxu1 %v227_v3  ;;  %v225_v7 = vld [vmem:[#allocation6 + $0x2e0] sm:$0xff]  ;;  %285 = vmatprep.subr.mxu0 %v162_v4  ;;  %v224_v9 = vld [vmem:[#allocation6 + $0x2d8] sm:$0xff]  ;;  %v159_v10 = vld [vmem:[#allocation6 + $0xd0] sm:$0xff]  ;;  %p528_p10 = scmp.ne.s32.totalorder %s456_s1, %s527_s23  ;;  %p533_p12 = scmp.lt.s32.totalorder %s527_s23, %s527_s23 }
  0x21   :  { %356 = vmatprep.subr.mxu1 %v226_v5  ;;  %v223_v11 = vld [vmem:[#allocation6 + $0x2d0] sm:$0xff]  ;;  %286 = vmatpush1.msra.mxu0 %v161_v6  ;;  %v158_v12 = vld [vmem:[#allocation6 + $0xc8] sm:$0xff]  ;;  %v157_v14 = vld [vmem:[#allocation6 + $0xc0] sm:$0xff] }
  0x22   :  { %357 = vmatpush1.msra.mxu1 %v225_v7  ;;  %v222_v13 = vld [vmem:[#allocation6 + $0x2c8] sm:$0xff]  ;;  %287 = vmatprep.subr.mxu0 %v160_v8  ;;  %v221_v15 = vld [vmem:[#allocation6 + $0x2c0] sm:$0xff]  ;;  %v156_v16 = vld [vmem:[#allocation6 + $0xb8] sm:$0xff]  ;;  %p534_p13 = por %p533_p12, %p532_p11 }
  0x23   :  { %358 = vmatprep.subr.mxu1 %v224_v9  ;;  %288 = vmatpush1.msra.mxu0 %v159_v10  ;;  %v220_v17 = vld [vmem:[#allocation6 + $0x2b8] sm:$0xff]  ;;  %v155_v18 = vld [vmem:[#allocation6 + $0xb0] sm:$0xff]  ;;  %v154_v20 = vld [vmem:[#allocation6 + $0xa8] sm:$0xff] }
  0x24   :  { %359 = vmatpush1.msra.mxu1 %v223_v11  ;;  %289 = vmatprep.subr.mxu0 %v158_v12  ;;  %v219_v19 = vld [vmem:[#allocation6 + $0x2b0] sm:$0xff]  ;;  %v218_v21 = vld [vmem:[#allocation6 + $0x2a8] sm:$0xff]  ;;  %v153_v22 = vld [vmem:[#allocation6 + $0xa0] sm:$0xff]  ;;  %p535_p0 = pnand %p534_p13, %p528_p10 }
  0x25   :  { %360 = vmatprep.subr.mxu1 %v222_v13  ;;  %290 = vmatpush1.msra.mxu0 %v157_v14  ;;  %v217_v23 = vld [vmem:[#allocation6 + $0x2a0] sm:$0xff]  ;;  %v152_v24 = vld [vmem:[#allocation6 + $0x98] sm:$0xff]  ;;  %v151_v26 = vld [vmem:[#allocation6 + $0x90] sm:$0xff] }
  0x26   :  { %361 = vmatpush1.msra.mxu1 %v221_v15  ;;  %291 = vmatprep.subr.mxu0 %v156_v16  ;;  %v216_v25 = vld [vmem:[#allocation6 + $0x298] sm:$0xff]  ;;  %v215_v27 = vld [vmem:[#allocation6 + $0x290] sm:$0xff]  ;;  %v150_v28 = vld [vmem:[#allocation6 + $0x88] sm:$0xff] }
  0x27   :  { %362 = vmatprep.subr.mxu1 %v220_v17  ;;  %292 = vmatpush1.msra.mxu0 %v155_v18  ;;  %v214_v29 = vld [vmem:[#allocation6 + $0x288] sm:$0xff]  ;;  %v149_v30 = vld [vmem:[#allocation6 + $0x80] sm:$0xff]  ;;  %v148_v32 = vld [vmem:[#allocation6 + $0x78] sm:$0xff] }
  0x28   :  { %363 = vmatpush1.msra.mxu1 %v219_v19  ;;  %293 = vmatprep.subr.mxu0 %v154_v20  ;;  %v213_v31 = vld [vmem:[#allocation6 + $0x280] sm:$0xff]  ;;  %v212_v33 = vld [vmem:[#allocation6 + $0x278] sm:$0xff]  ;;  %v147_v34 = vld [vmem:[#allocation6 + $0x70] sm:$0xff] }
  0x29   :  { %364 = vmatprep.subr.mxu1 %v218_v21  ;;  %294 = vmatpush1.msra.mxu0 %v153_v22  ;;  %v211_v35 = vld [vmem:[#allocation6 + $0x270] sm:$0xff]  ;;  %v146_v36 = vld [vmem:[#allocation6 + $0x68] sm:$0xff]  ;;  %v145_v38 = vld [vmem:[#allocation6 + $0x60] sm:$0xff] }
  0x2a   :  { %365 = vmatpush1.msra.mxu1 %v217_v23  ;;  %295 = vmatprep.subr.mxu0 %v152_v24  ;;  %v210_v37 = vld [vmem:[#allocation6 + $0x268] sm:$0xff]  ;;  %v209_v39 = vld [vmem:[#allocation6 + $0x260] sm:$0xff]  ;;  %v144_v40 = vld [vmem:[#allocation6 + $0x58] sm:$0xff] }
  0x2b   :  { %366 = vmatprep.subr.mxu1 %v216_v25  ;;  %296 = vmatpush1.msra.mxu0 %v151_v26  ;;  %v208_v41 = vld [vmem:[#allocation6 + $0x258] sm:$0xff]  ;;  %v143_v42 = vld [vmem:[#allocation6 + $0x50] sm:$0xff]  ;;  %v142_v44 = vld [vmem:[#allocation6 + $0x48] sm:$0xff] }
  0x2c   :  { %367 = vmatpush1.msra.mxu1 %v215_v27  ;;  %297 = vmatprep.subr.mxu0 %v150_v28  ;;  %v207_v43 = vld [vmem:[#allocation6 + $0x250] sm:$0xff]  ;;  %v206_v45 = vld [vmem:[#allocation6 + $0x248] sm:$0xff]  ;;  %v141_v46 = vld [vmem:[#allocation6 + $0x40] sm:$0xff] }
  0x2d   :  { %368 = vmatprep.subr.mxu1 %v214_v29  ;;  %298 = vmatpush1.msra.mxu0 %v149_v30  ;;  %v205_v47 = vld [vmem:[#allocation6 + $0x240] sm:$0xff]  ;;  %v140_v48 = vld [vmem:[#allocation6 + $0x38] sm:$0xff]  ;;  %v139_v50 = vld [vmem:[#allocation6 + $0x30] sm:$0xff] }
  0x2e   :  { %369 = vmatpush1.msra.mxu1 %v213_v31  ;;  %299 = vmatprep.subr.mxu0 %v148_v32  ;;  %v204_v49 = vld [vmem:[#allocation6 + $0x238] sm:$0xff]  ;;  %v203_v51 = vld [vmem:[#allocation6 + $0x230] sm:$0xff]  ;;  %v138_v52 = vld [vmem:[#allocation6 + $0x28] sm:$0xff] }
  0x2f   :  { %370 = vmatprep.subr.mxu1 %v212_v33  ;;  %300 = vmatpush1.msra.mxu0 %v147_v34  ;;  %v202_v53 = vld [vmem:[#allocation6 + $0x228] sm:$0xff]  ;;  %v137_v54 = vld [vmem:[#allocation6 + $0x20] sm:$0xff]  ;;  %v136_v56 = vld [vmem:[#allocation6 + $0x18] sm:$0xff] }
  0x30   :  { %371 = vmatpush1.msra.mxu1 %v211_v35  ;;  %301 = vmatprep.subr.mxu0 %v146_v36  ;;  %v201_v55 = vld [vmem:[#allocation6 + $0x220] sm:$0xff]  ;;  %v200_v57 = vld [vmem:[#allocation6 + $0x218] sm:$0xff]  ;;  %v135_v58 = vld [vmem:[#allocation6 + $0x10] sm:$0xff] }
  0x31   :  { %372 = vmatprep.subr.mxu1 %v210_v37  ;;  %302 = vmatpush1.msra.mxu0 %v145_v38  ;;  %v199_v59 = vld [vmem:[#allocation6 + $0x210] sm:$0xff]  ;;  %v134_v60 = vld [vmem:[#allocation6 + $0x8] sm:$0xff]  ;;  %v133_v62 = vld [vmem:[#allocation6] sm:$0xff] }
  0x32   :  { %373 = vmatpush1.msra.mxu1 %v209_v39  ;;  %303 = vmatprep.subr.mxu0 %v144_v40  ;;  %v198_v61 = vld [vmem:[#allocation6 + $0x208] sm:$0xff]  ;;  %v197_v63 = vld [vmem:[#allocation6 + $0x200] sm:$0xff]  ;;  %v196_v0 = vld [vmem:[#allocation6 + $0x1f8] sm:$0xff] }
  0x33   :  { %374 = vmatprep.subr.mxu1 %v208_v41  ;;  %304 = vmatpush1.msra.mxu0 %v143_v42  ;;  %v260_v1 = vld [vmem:[#allocation6 + $0x3f8] sm:$0xff]  ;;  %v195_v2 = vld [vmem:[#allocation6 + $0x1f0] sm:$0xff]  ;;  %v194_v4 = vld [vmem:[#allocation6 + $0x1e8] sm:$0xff] }
  0x34   :  { %375 = vmatpush1.msra.mxu1 %v207_v43  ;;  %305 = vmatprep.subr.mxu0 %v142_v44  ;;  %v259_v3 = vld [vmem:[#allocation6 + $0x3f0] sm:$0xff]  ;;  %v258_v5 = vld [vmem:[#allocation6 + $0x3e8] sm:$0xff]  ;;  %v193_v6 = vld [vmem:[#allocation6 + $0x1e0] sm:$0xff] }
  0x35   :  { %376 = vmatprep.subr.mxu1 %v206_v45  ;;  %306 = vmatpush1.msra.mxu0 %v141_v46  ;;  %v257_v7 = vld [vmem:[#allocation6 + $0x3e0] sm:$0xff]  ;;  %v192_v8 = vld [vmem:[#allocation6 + $0x1d8] sm:$0xff]  ;;  %v191_v10 = vld [vmem:[#allocation6 + $0x1d0] sm:$0xff] }
  0x36   :  { %377 = vmatpush1.msra.mxu1 %v205_v47  ;;  %307 = vmatprep.subr.mxu0 %v140_v48  ;;  %v256_v9 = vld [vmem:[#allocation6 + $0x3d8] sm:$0xff]  ;;  %v255_v11 = vld [vmem:[#allocation6 + $0x3d0] sm:$0xff]  ;;  %v190_v12 = vld [vmem:[#allocation6 + $0x1c8] sm:$0xff] }
  0x37   :  { %378 = vmatprep.subr.mxu1 %v204_v49  ;;  %308 = vmatpush1.msra.mxu0 %v139_v50  ;;  %v254_v13 = vld [vmem:[#allocation6 + $0x3c8] sm:$0xff]  ;;  %v189_v14 = vld [vmem:[#allocation6 + $0x1c0] sm:$0xff]  ;;  %v188_v16 = vld [vmem:[#allocation6 + $0x1b8] sm:$0xff] }
  0x38   :  { %379 = vmatpush1.msra.mxu1 %v203_v51  ;;  %309 = vmatprep.subr.mxu0 %v138_v52  ;;  %v253_v15 = vld [vmem:[#allocation6 + $0x3c0] sm:$0xff]  ;;  %v252_v17 = vld [vmem:[#allocation6 + $0x3b8] sm:$0xff]  ;;  %v187_v18 = vld [vmem:[#allocation6 + $0x1b0] sm:$0xff] }
  0x39   :  { %380 = vmatprep.subr.mxu1 %v202_v53  ;;  %310 = vmatpush1.msra.mxu0 %v137_v54  ;;  %v251_v19 = vld [vmem:[#allocation6 + $0x3b0] sm:$0xff]  ;;  %v186_v20 = vld [vmem:[#allocation6 + $0x1a8] sm:$0xff]  ;;  %v185_v22 = vld [vmem:[#allocation6 + $0x1a0] sm:$0xff] }
  0x3a   :  { %381 = vmatpush1.msra.mxu1 %v201_v55  ;;  %311 = vmatprep.subr.mxu0 %v136_v56  ;;  %v250_v21 = vld [vmem:[#allocation6 + $0x3a8] sm:$0xff]  ;;  %v249_v23 = vld [vmem:[#allocation6 + $0x3a0] sm:$0xff]  ;;  %v184_v24 = vld [vmem:[#allocation6 + $0x198] sm:$0xff] }
  0x3b   :  { %382 = vmatprep.subr.mxu1 %v200_v57  ;;  %312 = vmatpush1.msra.mxu0 %v135_v58  ;;  %v248_v25 = vld [vmem:[#allocation6 + $0x398] sm:$0xff]  ;;  %v183_v26 = vld [vmem:[#allocation6 + $0x190] sm:$0xff]  ;;  %v182_v28 = vld [vmem:[#allocation6 + $0x188] sm:$0xff] }
  0x3c   :  { %383 = vmatpush1.msra.mxu1 %v199_v59  ;;  %313 = vmatprep.subr.mxu0 %v134_v60  ;;  %v247_v27 = vld [vmem:[#allocation6 + $0x390] sm:$0xff]  ;;  %v246_v29 = vld [vmem:[#allocation6 + $0x388] sm:$0xff]  ;;  %v181_v31 = vld [vmem:[#allocation6 + $0x180] sm:$0xff]  ;;  %v559_v60 = vmov 1983009808  }
  0x3d   :  { %384 = vmatprep.subr.mxu1 %v198_v61  ;;  %314 = vmatpush1.msra.mxu0 %v133_v62  ;;  %v40_v30 = vld [vmem:[#allocation3] ss:$4 sm:$0x3]  ;;  %v245_v32 = vld [vmem:[#allocation6 + $0x380] sm:$0xff]  ;;  %v180_v43 = vld [vmem:[#allocation6 + $0x178] sm:$0xff]  ;;  %v264_v61 = vunpack.c.l.s4 %v559_v60  ;;  %v266_v62 = vlaneseq }
  0x3e   :  { %385 = vmatpush1.msra.mxu1 %v197_v63  ;;  %315 = vmatprep.subr.mxu0 %v196_v0  ;;  %v42_v33 = vld [vmem:[#allocation3 + $0x8] ss:$4 sm:$0x3]  ;;  %v46_v34 = vld [vmem:[#allocation3 + $0x1] ss:$4 sm:$0x3] }
  0x3f   :  { %386 = vmatprep.subr.mxu1 %v260_v1  ;;  %316 = vmatpush2.msra.mxu0 %v195_v2  ;;  %v48_v35 = vld [vmem:[#allocation3 + $0x9] ss:$4 sm:$0x3]  ;;  %v49_v36 = vadd.f32 %v46_v34, %v40_v30  ;;  %v51_v37 = vmax.f32 %v40_v30, %v46_v34  ;;  %v54_v38 = vld [vmem:[#allocation3 + $0x2] ss:$4 sm:$0x3] }
  0x40   :  { %387 = vmatpush2.msra.mxu1 %v259_v3  ;;  %317 = vmatprep.subr.mxu0 %v194_v4  ;;  %v50_v39 = vadd.f32 %v48_v35, %v42_v33  ;;  %v52_v40 = vmax.f32 %v42_v33, %v48_v35  ;;  %v56_v41 = vld [vmem:[#allocation3 + $0xa] ss:$4 sm:$0x3]  ;;  %v62_v42 = vld [vmem:[#allocation3 + $0x3] ss:$4 sm:$0x3] }
  0x41   :  { %388 = vmatprep.subr.mxu1 %v258_v5  ;;  %318 = vmatpush2.msra.mxu0 %v193_v6  ;;  %v244_v44 = vld [vmem:[#allocation6 + $0x378] sm:$0xff]  ;;  %v57_v45 = vadd.f32 %v54_v38, %v49_v36  ;;  %v59_v46 = vmax.f32 %v51_v37, %v54_v38  ;;  %v179_v48 = vld [vmem:[#allocation6 + $0x170] sm:$0xff]  ;;  %v178_v52 = vld [vmem:[#allocation6 + $0x168] sm:$0xff] }
  0x42   :  { %389 = vmatpush2.msra.mxu1 %v257_v7  ;;  %319 = vmatprep.subr.mxu0 %v192_v8  ;;  %v64_v47 = vld [vmem:[#allocation3 + $0xb] ss:$4 sm:$0x3]  ;;  %v243_v49 = vld [vmem:[#allocation6 + $0x370] sm:$0xff]  ;;  %v58_v50 = vadd.f32 %v56_v41, %v50_v39  ;;  %v60_v51 = vmax.f32 %v52_v40, %v56_v41  ;;  %v242_v53 = vld [vmem:[#allocation6 + $0x368] sm:$0xff] }
  0x43   :  { %390 = vmatprep.subr.mxu1 %v256_v9  ;;  %320 = vmatpush2.msra.mxu0 %v191_v10  ;;  %v65_v54 = vadd.f32 %v62_v42, %v57_v45  ;;  %v67_v55 = vmax.f32 %v59_v46, %v62_v42  ;;  %v177_v56 = vld [vmem:[#allocation6 + $0x160] sm:$0xff]  ;;  %v176_v63 = vld [vmem:[#allocation6 + $0x158] sm:$0xff]  ;;  %v175_v1 = vld [vmem:[#allocation6 + $0x150] sm:$0xff]  ;;  %v265_v9 = vunpack.c.0.s8 %v264_v61  ;;  %v267_v10 = vshrl.u32 %v266_v62, 7 }
  0x44   :  { %391 = vmatpush2.msra.mxu1 %v255_v11  ;;  %321 = vmatprep.subr.mxu0 %v190_v12  ;;  %v241_v57 = vld [vmem:[#allocation6 + $0x360] sm:$0xff]  ;;  %v66_v58 = vadd.f32 %v64_v47, %v58_v50  ;;  %v68_v59 = vmax.f32 %v60_v51, %v64_v47  ;;  %v240_v0 = vld [vmem:[#allocation6 + $0x358] sm:$0xff]  ;;  %v239_v2 = vld [vmem:[#allocation6 + $0x350] sm:$0xff] }
  0x45   :  { %392 = vmatprep.subr.mxu1 %v254_v13  ;;  %322 = vmatpush2.msra.mxu0 %v189_v14  ;;  %v174_v5 = vld [vmem:[#allocation6 + $0x148] sm:$0xff]  ;;  %v173_v7 = vld [vmem:[#allocation6 + $0x140] sm:$0xff]  ;;  %v172_v11 = vld [vmem:[#allocation6 + $0x138] sm:$0xff] }
  0x46   :  { %393 = vmatpush2.msra.mxu1 %v253_v15  ;;  %323 = vmatprep.subr.mxu0 %v188_v16  ;;  %v75_v3 = vcombine.low %v65_v54, %v66_v58  ;;  %v87_v4 = vcombine.low %v67_v55, %v68_v59  ;;  %v238_v6 = vld [vmem:[#allocation6 + $0x348] sm:$0xff]  ;;  %v237_v8 = vld [vmem:[#allocation6 + $0x340] sm:$0xff]  ;;  %v236_v12 = vld [vmem:[#allocation6 + $0x338] sm:$0xff] }
  0x47   :  { %394 = vmatprep.subr.mxu1 %v252_v17  ;;  %324 = vmatpush2.msra.mxu0 %v187_v18  ;;  %v171_v13 = vld [vmem:[#allocation6 + $0x130] sm:$0xff]  ;;  %v170_v15 = vld [vmem:[#allocation6 + $0x128] sm:$0xff]  ;;  %v169_v17 = vld [vmem:[#allocation6 + $0x120] sm:$0xff] }
  0x48   :  { %395 = vmatpush2.msra.mxu1 %v251_v19  ;;  %325 = vmatprep.subr.mxu0 %v186_v20  ;;  %465 = vst.sshfl [vmem:[#allocation2] sm:$0x33 pattern:$0x75316420] %v75_v3  ;;  %v235_v14 = vld [vmem:[#allocation6 + $0x330] sm:$0xff]  ;;  %v234_v16 = vld [vmem:[#allocation6 + $0x328] sm:$0xff]  ;;  %v268_v19 = vsub.s32 %v265_v9, %v267_v10 }
  0x49   :  { %396 = vmatprep.subr.mxu1 %v250_v21  ;;  %326 = vmatpush2.msra.mxu0 %v185_v22  ;;  %466 = vst.sshfl [vmem:[#allocation2 + $0x4] sm:$0x33 pattern:$0x75316420] %v87_v4  ;;  %v233_v18 = vld [vmem:[#allocation6 + $0x320] sm:$0xff]  ;;  %v168_v20 = vld [vmem:[#allocation6 + $0x118] sm:$0xff] }
  0x4a   :  { %397 = vmatpush2.msra.mxu1 %v249_v23  ;;  %327 = vmatprep.subr.mxu0 %v184_v24  ;;  %v232_v21 = vld [vmem:[#allocation6 + $0x318] sm:$0xff]  ;;  %v167_v22 = vld [vmem:[#allocation6 + $0x110] sm:$0xff]  ;;  %v166_v24 = vld [vmem:[#allocation6 + $0x108] sm:$0xff] }
  0x4b   :  { %398 = vmatprep.subr.mxu1 %v248_v25  ;;  %328 = vmatpush2.msra.mxu0 %v183_v26  ;;  %v231_v23 = vld [vmem:[#allocation6 + $0x310] sm:$0xff]  ;;  %v230_v25 = vld [vmem:[#allocation6 + $0x308] sm:$0xff] }
  0x4c   :  { %399 = vmatpush2.msra.mxu1 %v247_v27  ;;  %329 = vmatprep.subr.mxu0 %v182_v28  ;;  %v165_v27 = vld [vmem:[#allocation6 + $0x100] sm:$0xff] }
  0x4d   :  { %400 = vmatprep.subr.mxu1 %v246_v29  ;;  %330 = vmatpush2.msra.mxu0 %v181_v31  ;;  %v229_v29 = vld [vmem:[#allocation6 + $0x300] sm:$0xff] }
  0x4e   :  { %401 = vmatpush2.msra.mxu1 %v245_v32  ;;  %331 = vmatprep.subr.mxu0 %v180_v43 }
  0x4f   :  { %402 = vmatprep.subr.mxu1 %v244_v44  ;;  %332 = vmatpush2.msra.mxu0 %v179_v48 }
  0x50   :  { %403 = vmatpush2.msra.mxu1 %v243_v49  ;;  %333 = vmatprep.subr.mxu0 %v178_v52  ;;  %v132_v26 = vld [vmem:[#allocation2] sm:$0xff] }
  0x51   :  { %404 = vmatprep.subr.mxu1 %v242_v53  ;;  %334 = vmatpush2.msra.mxu0 %v177_v56  ;;  %v269_v28 = vrot.slane %v132_v26, %v268_v19  ;;  %v262_v30 = vcombine.high %v132_v26, %v132_v26 }
  0x52   :  { %405 = vmatpush2.msra.mxu1 %v241_v57  ;;  %335 = vmatprep.subr.mxu0 %v176_v63 }
  0x53   :  { %406 = vmatprep.subr.mxu1 %v240_v0  ;;  %336 = vmatpush2.msra.mxu0 %v175_v1  ;;  %v277_v31 = vcombine.high %v269_v28, %v269_v28  ;;  %v276_v32 = vrot.slane %v262_v30, %v268_v19 }
  0x54   :  { %407 = vmatpush2.msra.mxu1 %v239_v2  ;;  %337 = vmatprep.subr.mxu0 %v174_v5 }
  0x55   :  { %408 = vmatprep.subr.mxu1 %v238_v6  ;;  %338 = vmatpush2.msra.mxu0 %v173_v7  ;;  %v278_v33 = vcombine.high %v276_v32, %v276_v32 }
  0x56   :  { %409 = vmatpush2.msra.mxu1 %v237_v8  ;;  %339 = vmatprep.subr.mxu0 %v172_v11 }
  0x57   :  { %410 = vmatprep.subr.mxu1 %v236_v12  ;;  %340 = vmatpush2.msra.mxu0 %v171_v13 }
  0x58   :  { %411 = vmatpush2.msra.mxu1 %v235_v14  ;;  %341 = vmatprep.subr.mxu0 %v170_v15 }
  0x59   :  { %412 = vmatprep.subr.mxu1 %v234_v16  ;;  %342 = vmatpush2.msra.mxu0 %v169_v17 }
  0x5a   :  { %413 = vmatpush2.msra.mxu1 %v233_v18  ;;  %343 = vmatprep.subr.mxu0 %v168_v20 }
  0x5b   :  { %414 = vmatprep.subr.mxu1 %v232_v21  ;;  %344 = vmatpush2.msra.mxu0 %v167_v22 }
  0x5c   :  { %415 = vmatpush2.msra.mxu1 %v231_v23  ;;  %345 = vmatprep.subr.mxu0 %v166_v24 }
  0x5d   :  { %416 = vmatprep.subr.mxu1 %v230_v25  ;;  %346 = vmatpush2.msra.mxu0 %v165_v27 }
  0x5e   :  { %417 = vmatpush2.msra.mxu1 %v229_v29  ;;  %347 = vmatprep.mubr.f32.mxu0 %v277_v31 }
  0x5f   :  { %348 = vmatmul.mubr.f32.vlgmr.msra.gmra.mxu0 %v269_v28  ;;  %418 = vmatprep.mubr.f32.mxu1 %v278_v33 }
  0x60   :  { %419 = vmatmul.mubr.f32.vlgmr.msra.gmra.mxu1 %v276_v32 }
 0x11f   :  { %v349_v34 = vpop.f32.mrf.mxu0 }
 0x120   :  { %v420_v35 = vpop.f32.mrf.mxu1 }
 0x121   :  { %v351_v36 = vpop.f32.mrf.mxu0  ;;  %v421_v37 = vadd.f32 %v420_v35, %v349_v34 }
 0x122   :  { %v422_v38 = vpop.f32.mrf.mxu1 }
 0x123   :  { %v467_v39 = vmul.f32 -1.442695, %v421_v37  ;;  %v423_v40 = vadd.f32 %v422_v38, %v351_v36 }
 0x125   :  { %479 = vpow2.f32 %v467_v39  ;;  %v468_v41 = vmul.f32 -1.442695, %v423_v40 }
 0x127   :  { %481 = vpow2.f32 %v468_v41 }
 0x132   :  { %v480_v42 = vpop.eup %479 }
 0x133   :  { %v431_v43 = vadd.f32 1.0, %v480_v42 }
 0x134   :  { %v482_v44 = vpop.eup %481 }
 0x135   :  { %v432_v45 = vadd.f32 1.0, %v482_v44  ;;  %483 = vrcp.f32 %v431_v43 }
 0x137   :  { %485 = vrcp.f32 %v432_v45 }
 0x142   :  { %v484_v46 = vpop.eup %483 }
 0x144   :  { %v486_v47 = vpop.eup %485 }
 0x145   :  { %v439_v48 = vcombine.low %v484_v46, %v486_v47 }
 0x147   :  { %469 = vst.sshfl [vmem:[#allocation8] sm:$0x33 pattern:$0x76325410] %v439_v48 }
 0x148   :  { %538 = shalt.err (!%p535_p0)
}
 0x149   :  { %458 = dma.vmem_to_hbm [thread:$0]  %s456_s1, 64, %s587_s2, [#allocation5]  }
 0x14a   :  { %551 = dma.done.wait [#allocation5], 64  }
 0x14b   :  { %552 = vsyncadd [#allocation5], 4294967232 }
 0x14c   :  { %462 = vsyncpa [#allocation4], 1 }
 0x14d   :  { %463 = vsyncpa [#allocation7], 1 }
 0x14e   :  { %464 = vsyncpa [#allocation5], 1 }

</bundles_post_ra>
